<compile_context>
chip_gen: v6e
topology: v6e:2x2x1
jax: 0.10.0
libtpu: 0.0.40
codegen_flags: <defaults>
</compile_context>

<pallas_src>
import functools

import jax
import jax.numpy as jnp
from jax.experimental import pallas as pl
from jax.experimental.pallas import tpu as pltpu

LANE = 128


def _round_up(n, m):
    return ((n + m - 1) // m) * m


def _fcnet_kernel(x_ref, w1_ref, b1_ref, w2_ref, b2_ref, w3_ref, b3_ref, o_ref):
    """Fused: linear_in -> tanh -> linear_hidden -> tanh -> linear_out.

    Matmul inputs take the (possibly bf16) weight dtype; accumulation, bias add
    and tanh stay f32 (preferred_element_type=jnp.float32, f32 EUP tanh).
    """
    x = x_ref[...].astype(w1_ref.dtype)
    h = jnp.dot(x, w1_ref[...], preferred_element_type=jnp.float32) + b1_ref[...]
    h = jnp.tanh(h)                       # f32 tanh on the EUP slot

    h = h.astype(w2_ref.dtype)
    h = jnp.dot(h, w2_ref[...], preferred_element_type=jnp.float32) + b2_ref[...]
    h = jnp.tanh(h)

    h = h.astype(w3_ref.dtype)
    out = jnp.dot(h, w3_ref[...], preferred_element_type=jnp.float32) + b3_ref[...]
    o_ref[...] = out.astype(o_ref.dtype)


def prepare_fcnet_params(params, matmul_dtype=None):
    """One-time parameter prep (do NOT call per forward pass).

    Pads the hidden dim to a lane multiple (padded rows/cols are exact zeros, so
    the math is unchanged: tanh(0)=0 feeds zero weight rows) and optionally
    pre-casts the weights to a narrower MXU dtype (e.g. bf16).  The input
    (n_in) and output (n_out) dims are intentionally NOT padded -- their HBM
    traffic dominates at small feature sizes and the MXU handles small K/N.
    """
    w1, b1 = params["w1"], params["b1"]   # [n_in, H], [1, H]
    w2, b2 = params["w2"], params["b2"]   # [H, H],    [1, H]
    w3, b3 = params["w3"], params["b3"]   # [H, n_out],[1, n_out]
    H = w1.shape[1]
    H_p = _round_up(H, LANE)

    def pad2(a, rows, cols):
        pr, pc = rows - a.shape[0], cols - a.shape[1]
        return jnp.pad(a, ((0, pr), (0, pc))) if (pr or pc) else a

    w1 = pad2(w1, w1.shape[0], H_p)       # [n_in, H_p]
    b1 = pad2(b1, 1, H_p)
    w2 = pad2(w2, H_p, H_p)               # [H_p, H_p]
    b2 = pad2(b2, 1, H_p)
    w3 = pad2(w3, H_p, w3.shape[1])       # [H_p, n_out]
    if matmul_dtype is not None:
        # bf16 weights in HBM: half the weight DMA bytes / resident VMEM and no
        # per-grid-step weight casts in the kernel.  Biases stay f32.
        w1, w2, w3 = (w.astype(matmul_dtype) for w in (w1, w2, w3))
    return {"w1": w1, "b1": b1, "w2": w2, "b2": b2, "w3": w3, "b3": b3}


def _choose_block_b(B, block_b):
    if block_b is None:
        # v5e/v6e (single TC): fewest grid steps wins (per-step overhead ~0.35us).
        # v7x (2 TCs): >=2 steps lets the "parallel" batch axis shard across cores.
        # Compromise: split into 2 steps only once each step still has >=128 rows.
        block_b = pl.cdiv(B, 2) if B >= 256 else B
        block_b = min(block_b, 2048)      # bound double-buffered x/out VMEM
    if block_b >= B:
        return B                          # full batch: any B is legal as a full dim
    return max(8, _round_up(block_b, 8))  # partial tiles must be sublane-aligned


@functools.partial(jax.jit, static_argnames=("block_b",))
def fcnet_forward(x, prepared_params, block_b=None):
    """x: [B, n_input]; prepared_params: output of prepare_fcnet_params()."""
    w1, b1 = prepared_params["w1"], prepared_params["b1"]
    w2, b2 = prepared_params["w2"], prepared_params["b2"]
    w3, b3 = prepared_params["w3"], prepared_params["b3"]

    B, n_in = x.shape
    H_p = w1.shape[1]
    n_out = w3.shape[1]

    block_b = _choose_block_b(B, block_b)
    grid = (pl.cdiv(B, block_b),)
    # Note: if B % block_b != 0, the out-of-bounds rows of the last tile carry
    # unspecified data through dot/tanh but are clipped on writeback (safe; no
    # batch-coupled reductions happen inside the kernel).

    # Advisory cost (real, unpadded x/out traffic + prepared-weight bytes).
    flops = 2 * B * (n_in * H_p + H_p * H_p + H_p * n_out)
    transcendentals = 2 * B * H_p
    bytes_accessed = (
        x.size * x.dtype.itemsize
        + sum(a.size * a.dtype.itemsize for a in (w1, b1, w2, b2, w3, b3))
        + B * n_out * x.dtype.itemsize
    )

    return pl.pallas_call(
        _fcnet_kernel,
        out_shape=jax.ShapeDtypeStruct((B, n_out), x.dtype),
        grid=grid,
        in_specs=[
            # Unpadded activations, batch-tiled (last dim == full array dim -> legal).
            pl.BlockSpec((block_b, n_in), lambda i: (i, 0)),
            # Weights / biases: constant index_map -> DMAed once, VMEM-resident.
            pl.BlockSpec((n_in, H_p), lambda i: (0, 0)),
            pl.BlockSpec((1, H_p), lambda i: (0, 0)),
            pl.BlockSpec((H_p, H_p), lambda i: (0, 0)),
            pl.BlockSpec((1, H_p), lambda i: (0, 0)),
            pl.BlockSpec((H_p, n_out), lambda i: (0, 0)),
            pl.BlockSpec((1, n_out), lambda i: (0, 0)),
        ],
        # Unpadded output (last dim == full array dim) -> no post-slice, 32x less
        # output HBM traffic than the padded variant at n_out=4.
        out_specs=pl.BlockSpec((block_b, n_out), lambda i: (i, 0)),
        compiler_params=pltpu.CompilerParams(
            dimension_semantics=("parallel",),   # batch axis shards across TCs (v7x)
        ),
        cost_estimate=pl.CostEstimate(
            flops=flops,
            transcendentals=transcendentals,
            bytes_accessed=bytes_accessed,
        ),
    )(x, w1, b1, w2, b2, w3, b3)


def xavier_uniform(key, fan_out, fan_in, dtype=jnp.float32):
    # Matches torch.nn.init.xavier_uniform_ on a (fan_out, fan_in) weight.
    bound = (6.0 / (fan_in + fan_out)) ** 0.5
    return jax.random.uniform(key, (fan_out, fan_in), dtype=dtype,
                              minval=-bound, maxval=bound)


def init_fcnet_params(key, n_input, n_output, hidden_size=64):
    k1, k2, k3 = jax.random.split(key, 3)
    # PyTorch Linear weight is [out, in]; pre-transpose to [in, out] for the kernel.
    w_in = xavier_uniform(k1, hidden_size, n_input)
    w_hid = xavier_uniform(k2, hidden_size, hidden_size)
    w_out = xavier_uniform(k3, n_output, hidden_size)
    return {
        "w1": w_in.T, "b1": jnp.zeros((1, hidden_size), jnp.float32),
        "w2": w_hid.T, "b2": jnp.zeros((1, hidden_size), jnp.float32),
        "w3": w_out.T, "b3": jnp.zeros((1, n_output), jnp.float32),
    }


def fcnet_ref(x, params):
    h = jnp.tanh(x @ params["w1"] + params["b1"])
    h = jnp.tanh(h @ params["w2"] + params["b2"])
    return h @ params["w3"] + params["b3"]


if __name__ == "__main__":
    key = jax.random.PRNGKey(0)
    k_param, k_x = jax.random.split(key)

    n_input, n_output, hidden_size = 8, 4, 64
    batch = 256

    params = init_fcnet_params(k_param, n_input, n_output, hidden_size)
    x = jax.random.normal(k_x, (batch, n_input), dtype=jnp.float32)
    ref = fcnet_ref(x, params)

    # f32 path: exact semantics of the torch module (weights padded once at prep).
    prep_f32 = prepare_fcnet_params(params)
    out = jax.block_until_ready(fcnet_forward(x, prep_f32))
    assert out.shape == (batch, n_output), out.shape
    assert jnp.allclose(out, ref, atol=1e-5, rtol=1e-5), "f32 mismatch vs reference"

    # bf16-matmul fast path (bf16-native MXU on v5e/v6e/v7x): weights pre-cast to
    # bf16 in HBM; accumulation, bias add and tanh stay f32 inside the kernel.
    prep_bf16 = prepare_fcnet_params(params, matmul_dtype=jnp.bfloat16)
    out_bf16 = jax.block_until_ready(fcnet_forward(x, prep_bf16))
    assert out_bf16.shape == (batch, n_output), out_bf16.shape
    assert jnp.allclose(out_bf16, ref, atol=5e-2, rtol=5e-2), "bf16 mismatch vs reference"

    print("KERNEL_OK")
</pallas_src>

<mosaic_0001>
module attributes {stable_mosaic.version = 11 : i64} {
  func.func @_fcnet_kernel(%arg0: i32, %arg1: memref<128x8xf32, #tpu.memory_space<vmem>>, %arg2: memref<8x128xf32, #tpu.memory_space<vmem>>, %arg3: memref<1x128xf32, #tpu.memory_space<vmem>>, %arg4: memref<128x128xf32, #tpu.memory_space<vmem>>, %arg5: memref<1x128xf32, #tpu.memory_space<vmem>>, %arg6: memref<128x4xf32, #tpu.memory_space<vmem>>, %arg7: memref<1x4xf32, #tpu.memory_space<vmem>>, %arg8: memref<128x4xf32, #tpu.memory_space<vmem>>) attributes {dimension_semantics = [#tpu.dimension_semantics<parallel>], iteration_bounds = array<i64: 2>, scalar_prefetch = 0 : i64, scratch_operands = 0 : i64, tpu.core_type = #tpu.core_type<tc>, window_params = [{transform_indices = @transform_0, window_bounds = array<i64: 128, 8>}, {pipeline_mode = #tpu.pipeline_mode<synchronous>, transform_indices = @transform_1, window_bounds = array<i64: 8, 128>}, {pipeline_mode = #tpu.pipeline_mode<synchronous>, transform_indices = @transform_2, window_bounds = array<i64: 1, 128>}, {pipeline_mode = #tpu.pipeline_mode<synchronous>, transform_indices = @transform_3, window_bounds = array<i64: 128, 128>}, {pipeline_mode = #tpu.pipeline_mode<synchronous>, transform_indices = @transform_4, window_bounds = array<i64: 1, 128>}, {pipeline_mode = #tpu.pipeline_mode<synchronous>, transform_indices = @transform_5, window_bounds = array<i64: 128, 4>}, {pipeline_mode = #tpu.pipeline_mode<synchronous>, transform_indices = @transform_6, window_bounds = array<i64: 1, 4>}, {transform_indices = @transform_7, window_bounds = array<i64: 128, 4>}]} {
    %c0 = arith.constant 0 : index
    %c0_0 = arith.constant 0 : index
    %0 = vector.load %arg1[%c0, %c0_0] : memref<128x8xf32, #tpu.memory_space<vmem>>, vector<128x8xf32>
    %c0_1 = arith.constant 0 : index
    %c0_2 = arith.constant 0 : index
    %1 = vector.load %arg2[%c0_1, %c0_2] : memref<8x128xf32, #tpu.memory_space<vmem>>, vector<8x128xf32>
    %cst = arith.constant dense<0.000000e+00> : vector<128x128xf32>
    %2 = tpu.matmul %0, %1, %cst {dimension_numbers = #tpu.dot_dimension_numbers<[1], [0], [0], [1], [0, 0, 1, 1], [], []>} : vector<128x8xf32>, vector<8x128xf32>, vector<128x128xf32> -> vector<128x128xf32>
    %c0_3 = arith.constant 0 : index
    %c0_4 = arith.constant 0 : index
    %3 = vector.load %arg3[%c0_3, %c0_4] : memref<1x128xf32, #tpu.memory_space<vmem>>, vector<1x128xf32>
    %4 = vector.broadcast %3 : vector<1x128xf32> to vector<128x128xf32>
    %5 = arith.addf %2, %4 : vector<128x128xf32>
    %6 = math.tanh %5 : vector<128x128xf32>
    %c0_5 = arith.constant 0 : index
    %c0_6 = arith.constant 0 : index
    %7 = vector.load %arg4[%c0_5, %c0_6] : memref<128x128xf32, #tpu.memory_space<vmem>>, vector<128x128xf32>
    %cst_7 = arith.constant dense<0.000000e+00> : vector<128x128xf32>
    %8 = tpu.matmul %6, %7, %cst_7 {dimension_numbers = #tpu.dot_dimension_numbers<[1], [0], [0], [1], [0, 0, 1, 1], [], []>} : vector<128x128xf32>, vector<128x128xf32>, vector<128x128xf32> -> vector<128x128xf32>
    %c0_8 = arith.constant 0 : index
    %c0_9 = arith.constant 0 : index
    %9 = vector.load %arg5[%c0_8, %c0_9] : memref<1x128xf32, #tpu.memory_space<vmem>>, vector<1x128xf32>
    %10 = vector.broadcast %9 : vector<1x128xf32> to vector<128x128xf32>
    %11 = arith.addf %8, %10 : vector<128x128xf32>
    %12 = math.tanh %11 : vector<128x128xf32>
    %c0_10 = arith.constant 0 : index
    %c0_11 = arith.constant 0 : index
    %13 = vector.load %arg6[%c0_10, %c0_11] : memref<128x4xf32, #tpu.memory_space<vmem>>, vector<128x4xf32>
    %cst_12 = arith.constant dense<0.000000e+00> : vector<128x4xf32>
    %14 = tpu.matmul %12, %13, %cst_12 {dimension_numbers = #tpu.dot_dimension_numbers<[1], [0], [0], [1], [0, 0, 1, 1], [], []>} : vector<128x128xf32>, vector<128x4xf32>, vector<128x4xf32> -> vector<128x4xf32>
    %c0_13 = arith.constant 0 : index
    %c0_14 = arith.constant 0 : index
    %15 = vector.load %arg7[%c0_13, %c0_14] : memref<1x4xf32, #tpu.memory_space<vmem>>, vector<1x4xf32>
    %16 = vector.broadcast %15 : vector<1x4xf32> to vector<128x4xf32>
    %17 = arith.addf %14, %16 : vector<128x4xf32>
    %c0_15 = arith.constant 0 : index
    %c0_16 = arith.constant 0 : index
    %18 = vector.load %arg8[%c0_15, %c0_16] : memref<128x4xf32, #tpu.memory_space<vmem>>, vector<128x4xf32>
    tpu.vector_store %arg8[%c0_15, %c0_16], %17 {strides = array<i32>} : memref<128x4xf32, #tpu.memory_space<vmem>>, vector<128x4xf32>,
    return
  }
  func.func @transform_0(%arg0: i32) -> (i32, i32) {
    %c0_i32 = arith.constant 0 : i32
    %c0_i32_0 = arith.constant 0 : i32
    return %arg0, %c0_i32 : i32, i32
  }
  func.func @transform_1(%arg0: i32) -> (i32, i32) {
    %c0_i32 = arith.constant 0 : i32
    %c0_i32_0 = arith.constant 0 : i32
    %c0_i32_1 = arith.constant 0 : i32
    return %c0_i32, %c0_i32_0 : i32, i32
  }
  func.func @transform_2(%arg0: i32) -> (i32, i32) {
    %c0_i32 = arith.constant 0 : i32
    %c0_i32_0 = arith.constant 0 : i32
    %c0_i32_1 = arith.constant 0 : i32
    return %c0_i32, %c0_i32_0 : i32, i32
  }
  func.func @transform_3(%arg0: i32) -> (i32, i32) {
    %c0_i32 = arith.constant 0 : i32
    %c0_i32_0 = arith.constant 0 : i32
    %c0_i32_1 = arith.constant 0 : i32
    return %c0_i32, %c0_i32_0 : i32, i32
  }
  func.func @transform_4(%arg0: i32) -> (i32, i32) {
    %c0_i32 = arith.constant 0 : i32
    %c0_i32_0 = arith.constant 0 : i32
    %c0_i32_1 = arith.constant 0 : i32
    return %c0_i32, %c0_i32_0 : i32, i32
  }
  func.func @transform_5(%arg0: i32) -> (i32, i32) {
    %c0_i32 = arith.constant 0 : i32
    %c0_i32_0 = arith.constant 0 : i32
    %c0_i32_1 = arith.constant 0 : i32
    return %c0_i32, %c0_i32_0 : i32, i32
  }
  func.func @transform_6(%arg0: i32) -> (i32, i32) {
    %c0_i32 = arith.constant 0 : i32
    %c0_i32_0 = arith.constant 0 : i32
    %c0_i32_1 = arith.constant 0 : i32
    return %c0_i32, %c0_i32_0 : i32, i32
  }
  func.func @transform_7(%arg0: i32) -> (i32, i32) {
    %c0_i32 = arith.constant 0 : i32
    %c0_i32_0 = arith.constant 0 : i32
    return %arg0, %c0_i32 : i32, i32
  }
}

</mosaic_0001>

<bundles_post_ra>
// kernel: fcnet_forward.1
= control target key start
LH: loop header
LB: loop body
LE: loop exit
PB: predicated region body
PF: predicated region fallthrough
CT: control target
= control target key end

     0   :  { %s1310_s24 = smov 0   ;;  %s1510_s0 = inlined_call_operand.vmem [shape: f32[256,8], index: 0, kind: input, shape index: {}]   ;;  %s1511_s1 = inlined_call_operand.vmem [shape: f32[8,128], index: 1, kind: input, shape index: {}]   ;;  %s1512_s2 = inlined_call_operand.vmem [shape: f32[1,128], index: 2, kind: input, shape index: {}]   ;;  %s1513_s3 = inlined_call_operand.vmem [shape: f32[128,128], index: 3, kind: input, shape index: {}]   ;;  %s1514_s4 = inlined_call_operand.vmem [shape: f32[1,128], index: 4, kind: input, shape index: {}]   ;;  %s1515_s5 = inlined_call_operand.vmem [shape: f32[128,4], index: 5, kind: input, shape index: {}]   ;;  %s1516_s6 = inlined_call_operand.vmem [shape: f32[1,4], index: 6, kind: input, shape index: {}]   ;;  %s1517_s7 = inlined_call_operand.vmem [shape: f32[256,4], index: 7, kind: output, shape index: {}]  }
   0x1 LB: > { %s941_s25 = sadd.s32 4294967295, %s1268_s24   ;;  %p945_p0 = scmp.ge.s32.totalorder %s1268_s24, 1  ;;  %s1268_s24 = sphi %s1310_s24, %s17_s24  }
   0x2   : > { %p238_p1 = scmp.lt.s32.totalorder %s1268_s24, 3 }
   0x4   : > { %p239_p2 = pnand %p945_p0, %p238_p1 }
   0x5   : > { %s946_s28 = sshll.u32 (!%p239_p2), %s941_s25, 4 }
   0x6   : > { %242 = sbr.rel (%p239_p2) target bundleno = 666 (0x29a), region = 48  ;;  %p271_p3 = scmp.lt.s32.totalorder (!%p239_p2), %s946_s28, 31 }
   0xb   : > { %v298_v0 = vld [vmem:[%s1511_s1] sm:$0xff]  ;;  %v531_v1 = vld [vmem:[%s1513_s3 + $0x78] sm:$0xff]  ;;  %v530_v2 = vld [vmem:[%s1513_s3 + $0x70] sm:$0xff]  ;;  %s1519_s28 = smov (!%p271_p3, %s946_s28), 31  ;;  %vm306_vm0 = vcmask 64512   ;;  %vm868_vm1 = vcmask 31744  }
   0xc   : > { %1052 = vmatprep.subr.mxu0 %v298_v0  ;;  %1078 = vmatprep.subr.mxu1 %v531_v1  ;;  %v529_v3 = vld [vmem:[%s1513_s3 + $0x68] sm:$0xff]  ;;  %v528_v4 = vld [vmem:[%s1513_s3 + $0x60] sm:$0xff]  ;;  %s947_s14 = sshll.u32 %s1519_s28, 3  ;;  %v527_v5 = vld [vmem:[%s1513_s3 + $0x58] sm:$0xff] }
   0xd   : > { %1053 = vmatpush3.msra.mxu0 %v298_v0  ;;  %1079 = vmatpush3.msra.mxu1 %v531_v1  ;;  %s1341_s17 = scalar_lea.vmem %s1510_s0, %s947_s14  ;;  %v526_v9 = vld [vmem:[%s1513_s3 + $0x50] sm:$0xff]  ;;  %v525_v23 = vld [vmem:[%s1513_s3 + $0x48] sm:$0xff]  ;;  %v524_v24 = vld [vmem:[%s1513_s3 + $0x40] sm:$0xff]  ;;  %s1473_s22 = scalar_lea.vmem %s1517_s7, %s947_s14 }
   0xe   : > { %1080 = vmatprep.subr.mxu1 %v530_v2  ;;  %v282_v6 = vld [vmem:[%s1341_s17] sm:$0xff]  ;;  %v283_v7 = vld [vmem:[%s1341_s17 + $0x8] sm:$0xff]  ;;  %v284_v8 = vld [vmem:[%s1341_s17 + $0x10] sm:$0xff] }
   0xf   : > { %1081 = vmatpush3.msra.mxu1 %v530_v2  ;;  %1054 = vmatprep.mubr.msk.f32.mxu0 %vm306_vm0, %v282_v6  ;;  %v285_v10 = vld [vmem:[%s1341_s17 + $0x18] sm:$0xff]  ;;  %v286_v11 = vld [vmem:[%s1341_s17 + $0x20] sm:$0xff]  ;;  %v287_v12 = vld [vmem:[%s1341_s17 + $0x28] sm:$0xff] }
  0x10   : > { %1082 = vmatprep.subr.mxu1 %v529_v3  ;;  %1055 = vmatmul.mubr.msk.f32.vlgmr.msra.gmra.mxu0 %vm306_vm0, %v283_v7  ;;  %v288_v13 = vld [vmem:[%s1341_s17 + $0x30] sm:$0xff]  ;;  %v289_v14 = vld [vmem:[%s1341_s17 + $0x38] sm:$0xff]  ;;  %v290_v15 = vld [vmem:[%s1341_s17 + $0x40] sm:$0xff] }
  0x11   : > { %1083 = vmatpush3.msra.mxu1 %v529_v3  ;;  %1057 = vmatprep.mubr.msk.f32.mxu0 %vm306_vm0, %v284_v8  ;;  %v291_v16 = vld [vmem:[%s1341_s17 + $0x48] sm:$0xff]  ;;  %v292_v17 = vld [vmem:[%s1341_s17 + $0x50] sm:$0xff]  ;;  %v293_v18 = vld [vmem:[%s1341_s17 + $0x58] sm:$0xff] }
  0x12   : > { %1084 = vmatprep.subr.mxu1 %v528_v4  ;;  %v294_v19 = vld [vmem:[%s1341_s17 + $0x60] sm:$0xff]  ;;  %v295_v20 = vld [vmem:[%s1341_s17 + $0x68] sm:$0xff]  ;;  %v296_v21 = vld [vmem:[%s1341_s17 + $0x70] sm:$0xff] }
  0x13   : > { %1085 = vmatpush3.msra.mxu1 %v528_v4  ;;  %v297_v22 = vld [vmem:[%s1341_s17 + $0x78] sm:$0xff]  ;;  %v522_v26 = vld [vmem:[%s1513_s3 + $0x30] sm:$0xff]  ;;  %v521_v27 = vld [vmem:[%s1513_s3 + $0x28] sm:$0xff] }
  0x14   : > { %1086 = vmatprep.subr.mxu1 %v527_v5  ;;  %1058 = vmatmul.mubr.msk.f32.gmra.mxu0 %vm306_vm0, %v285_v10  ;;  %v523_v25 = vld [vmem:[%s1513_s3 + $0x38] sm:$0xff]  ;;  %v520_v28 = vld [vmem:[%s1513_s3 + $0x20] sm:$0xff]  ;;  %v518_v30 = vld [vmem:[%s1513_s3 + $0x10] sm:$0xff] }
  0x15   : > { %1087 = vmatpush3.msra.mxu1 %v527_v5  ;;  %1060 = vmatprep.mubr.msk.f32.mxu0 %vm306_vm0, %v286_v11  ;;  %v519_v29 = vld [vmem:[%s1513_s3 + $0x18] sm:$0xff]  ;;  %v517_v31 = vld [vmem:[%s1513_s3 + $0x8] sm:$0xff]  ;;  %v516_v32 = vld [vmem:[%s1513_s3] sm:$0xff] }
  0x16   : > { %1088 = vmatprep.subr.mxu1 %v526_v9  ;;  %v715_v33 = vld [vmem:[%s1515_s5 + $0x78] sm:$0xff]  ;;  %v714_v34 = vld [vmem:[%s1515_s5 + $0x70] sm:$0xff]  ;;  %v713_v35 = vld [vmem:[%s1515_s5 + $0x68] sm:$0xff] }
  0x17   : > { %1089 = vmatpush3.msra.mxu1 %v526_v9  ;;  %1134 = vmatprep.subr.mxu0 %v715_v33  ;;  %v712_v36 = vld [vmem:[%s1515_s5 + $0x60] sm:$0xff]  ;;  %v711_v37 = vld [vmem:[%s1515_s5 + $0x58] sm:$0xff]  ;;  %v710_v38 = vld [vmem:[%s1515_s5 + $0x50] sm:$0xff] }
  0x18   : > { %1061 = vmatmul.mubr.msk.f32.gmra.mxu0 %vm306_vm0, %v287_v12  ;;  %1090 = vmatprep.subr.mxu1 %v525_v23  ;;  %v709_v39 = vld [vmem:[%s1515_s5 + $0x48] sm:$0xff]  ;;  %v950_v40 = vld [vmem:[%s1512_s2] ss:$0 sm:$0xff] }
  0x19   : > { %1063 = vmatprep.mubr.msk.f32.mxu0 %vm306_vm0, %v288_v13  ;;  %1091 = vmatpush3.msra.mxu1 %v525_v23 }
  0x1a   : > { %1092 = vmatprep.subr.mxu1 %v524_v24  ;;  %1135 = vmatpush3.msra.mxu0 %v715_v33  ;;  %v700_v33 = vld [vmem:[%s1515_s5] sm:$0xff] }
  0x1b   : > { %1093 = vmatpush3.msra.mxu1 %v524_v24  ;;  %1136 = vmatprep.subr.mxu0 %v714_v34 }
  0x1c   : > { %1064 = vmatmul.mubr.msk.f32.gmra.mxu0 %vm306_vm0, %v289_v14  ;;  %1094 = vmatprep.subr.mxu1 %v523_v25 }
  0x1d   : > { %1066 = vmatprep.mubr.msk.f32.mxu0 %vm306_vm0, %v290_v15  ;;  %1095 = vmatpush3.msra.mxu1 %v523_v25  ;;  %v708_v25 = vld [vmem:[%s1515_s5 + $0x40] sm:$0xff] }
  0x1e   : > { %1096 = vmatprep.subr.mxu1 %v522_v26  ;;  %1137 = vmatpush3.msra.mxu0 %v714_v34  ;;  %v967_v34 = vld [vmem:[%s1514_s4] ss:$0 sm:$0xff] }
  0x1f   : > { %1097 = vmatpush3.msra.mxu1 %v522_v26  ;;  %1138 = vmatprep.subr.mxu0 %v713_v35  ;;  %v707_v26 = vld [vmem:[%s1515_s5 + $0x38] sm:$0xff] }
  0x20   : > { %1067 = vmatmul.mubr.msk.f32.gmra.mxu0 %vm306_vm0, %v291_v16  ;;  %1098 = vmatprep.subr.mxu1 %v521_v27 }
  0x21   : > { %1069 = vmatprep.mubr.msk.f32.mxu0 %vm306_vm0, %v292_v17  ;;  %1099 = vmatpush3.msra.mxu1 %v521_v27  ;;  %v706_v27 = vld [vmem:[%s1515_s5 + $0x30] sm:$0xff] }
  0x22   : > { %1100 = vmatprep.subr.mxu1 %v520_v28  ;;  %1139 = vmatpush3.msra.mxu0 %v713_v35 }
  0x23   : > { %1101 = vmatpush3.msra.mxu1 %v520_v28  ;;  %1140 = vmatprep.subr.mxu0 %v712_v36  ;;  %v705_v28 = vld [vmem:[%s1515_s5 + $0x28] sm:$0xff] }
  0x24   : > { %1070 = vmatmul.mubr.msk.f32.gmra.mxu0 %vm306_vm0, %v293_v18  ;;  %1102 = vmatprep.subr.mxu1 %v519_v29 }
  0x25   : > { %1072 = vmatprep.mubr.msk.f32.mxu0 %vm306_vm0, %v294_v19  ;;  %1103 = vmatpush3.msra.mxu1 %v519_v29  ;;  %v704_v29 = vld [vmem:[%s1515_s5 + $0x20] sm:$0xff] }
  0x26   : > { %1104 = vmatprep.subr.mxu1 %v518_v30  ;;  %1141 = vmatpush3.msra.mxu0 %v712_v36 }
  0x27   : > { %1105 = vmatpush3.msra.mxu1 %v518_v30  ;;  %1142 = vmatprep.subr.mxu0 %v711_v37  ;;  %v703_v30 = vld [vmem:[%s1515_s5 + $0x18] sm:$0xff] }
  0x28   : > { %1073 = vmatmul.mubr.msk.f32.gmra.mxu0 %vm306_vm0, %v295_v20  ;;  %1106 = vmatprep.subr.mxu1 %v517_v31 }
  0x29   : > { %1075 = vmatprep.mubr.msk.f32.mxu0 %vm306_vm0, %v296_v21  ;;  %1107 = vmatpush3.msra.mxu1 %v517_v31  ;;  %v702_v31 = vld [vmem:[%s1515_s5 + $0x10] sm:$0xff] }
  0x2a   : > { %1108 = vmatprep.subr.mxu1 %v516_v32  ;;  %1143 = vmatpush3.msra.mxu0 %v711_v37 }
  0x2b   : > { %1109 = vmatpush3.msra.mxu1 %v516_v32  ;;  %1144 = vmatprep.subr.mxu0 %v710_v38  ;;  %v701_v32 = vld [vmem:[%s1515_s5 + $0x8] sm:$0xff] }
  0x2c   : > { %1076 = vmatmul.mubr.msk.f32.gmra.mxu0 %vm306_vm0, %v297_v22 }
  0x2d   : > { %1145 = vmatpush3.msra.mxu0 %v710_v38 }
  0x2e   : > { %1146 = vmatprep.subr.mxu0 %v709_v39 }
  0x2f   : > { %1147 = vmatpush3.msra.mxu0 %v709_v39 }
  0x30   : > { %1148 = vmatprep.subr.mxu0 %v708_v25 }
  0x31   : > { %1149 = vmatpush3.msra.mxu0 %v708_v25 }
  0x32   : > { %1150 = vmatprep.subr.mxu0 %v707_v26 }
  0x33   : > { %1151 = vmatpush3.msra.mxu0 %v707_v26 }
  0x34   : > { %1152 = vmatprep.subr.mxu0 %v706_v27 }
  0x35   : > { %1153 = vmatpush3.msra.mxu0 %v706_v27 }
  0x36   : > { %1154 = vmatprep.subr.mxu0 %v705_v28 }
  0x37   : > { %1155 = vmatpush3.msra.mxu0 %v705_v28 }
  0x38   : > { %1156 = vmatprep.subr.mxu0 %v704_v29 }
  0x39   : > { %1157 = vmatpush3.msra.mxu0 %v704_v29 }
  0x3a   : > { %1158 = vmatprep.subr.mxu0 %v703_v30 }
  0x3b   : > { %1159 = vmatpush3.msra.mxu0 %v703_v30 }
  0x3c   : > { %1160 = vmatprep.subr.mxu0 %v702_v31 }
  0x3d   : > { %1161 = vmatpush3.msra.mxu0 %v702_v31 }
  0x3e   : > { %1162 = vmatprep.subr.mxu0 %v701_v32 }
  0x3f   : > { %1163 = vmatpush3.msra.mxu0 %v701_v32 }
  0x40   : > { %1164 = vmatprep.subr.mxu0 %v700_v33 }
  0x41   : > { %1165 = vmatpush3.msra.mxu0 %v700_v33 }
  0xd0   : > { %v1056_v41 = vpop.f32.mrf.mxu0 }
  0xd1   : > { %v427_v42 = vadd.f32 %v1056_v41, %v950_v40 }
  0xd2   : > { %v421_v43 = vpop.f32.mrf.mxu0 }
  0xd3   : > { %v422_v44 = vadd.f32 %v950_v40, %v421_v43 }
  0xd4   : > { %v1059_v45 = vpop.f32.mrf.mxu0 }
  0xd5   : > { %1198 = vtanh.f32 %v422_v44  ;;  %v437_v46 = vadd.f32 %v1059_v45, %v950_v40 }
  0xd6   : > { %1200 = vtanh.f32 %v427_v42  ;;  %v431_v47 = vpop.f32.mrf.mxu0 }
  0xd7   : > { %v432_v48 = vadd.f32 %v950_v40, %v431_v47 }
  0xd8   : > { %v1062_v49 = vpop.f32.mrf.mxu0 }
  0xd9   : > { %1202 = vtanh.f32 %v432_v48  ;;  %v447_v50 = vadd.f32 %v1062_v49, %v950_v40 }
  0xda   : > { %1204 = vtanh.f32 %v437_v46  ;;  %v441_v51 = vpop.f32.mrf.mxu0 }
  0xdb   : > { %v442_v52 = vadd.f32 %v950_v40, %v441_v51 }
  0xdc   : > { %v1065_v53 = vpop.f32.mrf.mxu0 }
  0xdd   : > { %1206 = vtanh.f32 %v442_v52  ;;  %v457_v54 = vadd.f32 %v1065_v53, %v950_v40 }
  0xde   : > { %1208 = vtanh.f32 %v447_v50  ;;  %v451_v55 = vpop.f32.mrf.mxu0 }
  0xdf   : > { %v452_v56 = vadd.f32 %v950_v40, %v451_v55 }
  0xe0   : > { %v1068_v57 = vpop.f32.mrf.mxu0 }
  0xe1   : > { %1210 = vtanh.f32 %v452_v56  ;;  %v467_v59 = vadd.f32 %v1068_v57, %v950_v40 }
  0xe2   : > { %v1199_v58 = vpop.eup %1198  ;;  %1212 = vtanh.f32 %v457_v54  ;;  %v461_v60 = vpop.f32.mrf.mxu0 }
  0xe3   : > { %v1201_v61 = vpop.eup %1200  ;;  %v462_v62 = vadd.f32 %v950_v40, %v461_v60  ;;  %1110 = vmatprep.mubr.f32.mxu1 %v1199_v58 }
  0xe4   : > { %v1071_v63 = vpop.f32.mrf.mxu0  ;;  %1111 = vmatmul.mubr.f32.vlgmr.msra.gmra.mxu1 %v1201_v61 }
  0xe5   : > { %1214 = vtanh.f32 %v462_v62  ;;  %v477_v1 = vadd.f32 %v1071_v63, %v950_v40 }
  0xe6   : > { %v1203_v0 = vpop.eup %1202  ;;  %1216 = vtanh.f32 %v467_v59  ;;  %v471_v2 = vpop.f32.mrf.mxu0 }
  0xe7   : > { %v1205_v3 = vpop.eup %1204  ;;  %v472_v4 = vadd.f32 %v950_v40, %v471_v2  ;;  %1113 = vmatprep.mubr.f32.mxu1 %v1203_v0 }
  0xe8   : > { %v1074_v5 = vpop.f32.mrf.mxu0  ;;  %1114 = vmatmul.mubr.f32.gmra.mxu1 %v1205_v3 }
  0xe9   : > { %1218 = vtanh.f32 %v472_v4  ;;  %v487_v7 = vadd.f32 %v1074_v5, %v950_v40 }
  0xea   : > { %v1207_v6 = vpop.eup %1206  ;;  %1220 = vtanh.f32 %v477_v1  ;;  %v481_v8 = vpop.f32.mrf.mxu0 }
  0xeb   : > { %v1209_v9 = vpop.eup %1208  ;;  %v482_v10 = vadd.f32 %v950_v40, %v481_v8  ;;  %1116 = vmatprep.mubr.f32.mxu1 %v1207_v6 }
  0xec   : > { %v1077_v11 = vpop.f32.mrf.mxu0  ;;  %1117 = vmatmul.mubr.f32.gmra.mxu1 %v1209_v9 }
  0xed   : > { %1222 = vtanh.f32 %v482_v10  ;;  %v497_v13 = vadd.f32 %v1077_v11, %v950_v40 }
  0xee   : > { %v1211_v12 = vpop.eup %1210  ;;  %1224 = vtanh.f32 %v487_v7  ;;  %v491_v14 = vpop.f32.mrf.mxu0 }
  0xef   : > { %v1213_v15 = vpop.eup %1212  ;;  %v492_v16 = vadd.f32 %v950_v40, %v491_v14  ;;  %1119 = vmatprep.mubr.f32.mxu1 %v1211_v12 }
  0xf0   : > { %1120 = vmatmul.mubr.f32.gmra.mxu1 %v1213_v15 }
  0xf1   : > { %1226 = vtanh.f32 %v492_v16 }
  0xf2   : > { %v1215_v17 = vpop.eup %1214  ;;  %1228 = vtanh.f32 %v497_v13 }
  0xf3   : > { %v1217_v18 = vpop.eup %1216  ;;  %1122 = vmatprep.mubr.f32.mxu1 %v1215_v17 }
  0xf4   : > { %1123 = vmatmul.mubr.f32.gmra.mxu1 %v1217_v18 }
  0xf6   : > { %v1219_v19 = vpop.eup %1218 }
  0xf7   : > { %v1221_v20 = vpop.eup %1220  ;;  %1125 = vmatprep.mubr.f32.mxu1 %v1219_v19  ;;  %v968_v19 = vld [vmem:[%s1516_s6] ss:$0 sm:$0xff] }
  0xf8   : > { %1126 = vmatmul.mubr.f32.gmra.mxu1 %v1221_v20 }
  0xfa   : > { %v1223_v21 = vpop.eup %1222 }
  0xfb   : > { %v1225_v22 = vpop.eup %1224  ;;  %1128 = vmatprep.mubr.f32.mxu1 %v1223_v21 }
  0xfc   : > { %1129 = vmatmul.mubr.f32.gmra.mxu1 %v1225_v22 }
  0xfe   : > { %v1227_v23 = vpop.eup %1226 }
  0xff   : > { %v1229_v24 = vpop.eup %1228  ;;  %1131 = vmatprep.mubr.f32.mxu1 %v1227_v23 }
 0x100   : > { %1132 = vmatmul.mubr.f32.gmra.mxu1 %v1229_v24 }
 0x1a4   : > { %v1112_v35 = vpop.f32.mrf.mxu1 }
 0x1a5   : > { %v611_v36 = vadd.f32 %v1112_v35, %v967_v34 }
 0x1a6   : > { %v605_v37 = vpop.f32.mrf.mxu1 }
 0x1a7   : > { %v606_v38 = vadd.f32 %v967_v34, %v605_v37 }
 0x1a8   : > { %v1115_v39 = vpop.f32.mrf.mxu1 }
 0x1a9   : > { %1230 = vtanh.f32 %v606_v38  ;;  %v621_v40 = vadd.f32 %v1115_v39, %v967_v34 }
 0x1aa   : > { %1232 = vtanh.f32 %v611_v36  ;;  %v615_v41 = vpop.f32.mrf.mxu1 }
 0x1ab   : > { %v616_v42 = vadd.f32 %v967_v34, %v615_v41 }
 0x1ac   : > { %v1118_v43 = vpop.f32.mrf.mxu1 }
 0x1ad   : > { %1234 = vtanh.f32 %v616_v42  ;;  %v631_v44 = vadd.f32 %v1118_v43, %v967_v34 }
 0x1ae   : > { %1236 = vtanh.f32 %v621_v40  ;;  %v625_v45 = vpop.f32.mrf.mxu1 }
 0x1af   : > { %v626_v46 = vadd.f32 %v967_v34, %v625_v45 }
 0x1b0   : > { %v1121_v47 = vpop.f32.mrf.mxu1 }
 0x1b1   : > { %1238 = vtanh.f32 %v626_v46  ;;  %v641_v48 = vadd.f32 %v1121_v47, %v967_v34 }
 0x1b2   : > { %1240 = vtanh.f32 %v631_v44  ;;  %v635_v49 = vpop.f32.mrf.mxu1 }
 0x1b3   : > { %v636_v50 = vadd.f32 %v967_v34, %v635_v49 }
 0x1b4   : > { %v1124_v51 = vpop.f32.mrf.mxu1 }
 0x1b5   : > { %1242 = vtanh.f32 %v636_v50  ;;  %v651_v53 = vadd.f32 %v1124_v51, %v967_v34 }
 0x1b6   : > { %v1231_v52 = vpop.eup %1230  ;;  %1244 = vtanh.f32 %v641_v48  ;;  %v645_v54 = vpop.f32.mrf.mxu1 }
 0x1b7   : > { %v1233_v55 = vpop.eup %1232  ;;  %v646_v56 = vadd.f32 %v967_v34, %v645_v54  ;;  %1166 = vmatprep.mubr.f32.mxu0 %v1231_v52 }
 0x1b8   : > { %v1127_v57 = vpop.f32.mrf.mxu1  ;;  %1167 = vmatmul.mubr.f32.vlgmr.msra.gmra.mxu0 %v1233_v55 }
 0x1b9   : > { %1246 = vtanh.f32 %v646_v56  ;;  %v661_v59 = vadd.f32 %v1127_v57, %v967_v34 }
 0x1ba   : > { %v1235_v58 = vpop.eup %1234  ;;  %1248 = vtanh.f32 %v651_v53  ;;  %v655_v60 = vpop.f32.mrf.mxu1 }
 0x1bb   : > { %v1237_v61 = vpop.eup %1236  ;;  %v656_v62 = vadd.f32 %v967_v34, %v655_v60  ;;  %1169 = vmatprep.mubr.f32.mxu0 %v1235_v58 }
 0x1bc   : > { %v1130_v63 = vpop.f32.mrf.mxu1  ;;  %1170 = vmatmul.mubr.f32.gmra.mxu0 %v1237_v61 }
 0x1bd   : > { %1250 = vtanh.f32 %v656_v62  ;;  %v671_v1 = vadd.f32 %v1130_v63, %v967_v34 }
 0x1be   : > { %v1239_v0 = vpop.eup %1238  ;;  %1252 = vtanh.f32 %v661_v59  ;;  %v665_v2 = vpop.f32.mrf.mxu1 }
 0x1bf   : > { %v1241_v3 = vpop.eup %1240  ;;  %v666_v4 = vadd.f32 %v967_v34, %v665_v2  ;;  %1172 = vmatprep.mubr.f32.mxu0 %v1239_v0 }
 0x1c0   : > { %v1133_v5 = vpop.f32.mrf.mxu1  ;;  %1173 = vmatmul.mubr.f32.gmra.mxu0 %v1241_v3 }
 0x1c1   : > { %1254 = vtanh.f32 %v666_v4  ;;  %v681_v7 = vadd.f32 %v1133_v5, %v967_v34 }
 0x1c2   : > { %v1243_v6 = vpop.eup %1242  ;;  %1256 = vtanh.f32 %v671_v1  ;;  %v675_v8 = vpop.f32.mrf.mxu1 }
 0x1c3   : > { %v1245_v9 = vpop.eup %1244  ;;  %v676_v10 = vadd.f32 %v967_v34, %v675_v8  ;;  %1175 = vmatprep.mubr.f32.mxu0 %v1243_v6 }
 0x1c4   : > { %1176 = vmatmul.mubr.f32.gmra.mxu0 %v1245_v9 }
 0x1c5   : > { %1258 = vtanh.f32 %v676_v10 }
 0x1c6   : > { %v1247_v11 = vpop.eup %1246  ;;  %1260 = vtanh.f32 %v681_v7 }
 0x1c7   : > { %v1249_v12 = vpop.eup %1248  ;;  %1178 = vmatprep.mubr.f32.mxu0 %v1247_v11 }
 0x1c8   : > { %1179 = vmatmul.mubr.f32.gmra.mxu0 %v1249_v12 }
 0x1ca   : > { %v1251_v13 = vpop.eup %1250 }
 0x1cb   : > { %v1253_v14 = vpop.eup %1252  ;;  %1181 = vmatprep.mubr.f32.mxu0 %v1251_v13 }
 0x1cc   : > { %1182 = vmatmul.mubr.f32.gmra.mxu0 %v1253_v14 }
 0x1ce   : > { %v1255_v15 = vpop.eup %1254 }
 0x1cf   : > { %v1257_v16 = vpop.eup %1256  ;;  %1184 = vmatprep.mubr.f32.mxu0 %v1255_v15 }
 0x1d0   : > { %1185 = vmatmul.mubr.f32.gmra.mxu0 %v1257_v16 }
 0x1d2   : > { %v1259_v17 = vpop.eup %1258 }
 0x1d3   : > { %v1261_v18 = vpop.eup %1260  ;;  %1187 = vmatprep.mubr.f32.mxu0 %v1259_v17 }
 0x1d4   : > { %1188 = vmatmul.mubr.f32.gmra.mxu0 %v1261_v18 }
 0x278   : > { %v1168_v20 = vpop.f32.mrf.mxu0 }
 0x279   : > { %v795_v21 = vadd.f32 %v1168_v20, %v968_v19 }
 0x27a   : > { %v789_v22 = vpop.f32.mrf.mxu0 }
 0x27b   : > { %870 = vst.msk [vmem:[%s1473_s22 + $0x8] sm:$0xff] %vm868_vm1, %v795_v21  ;;  %v790_v23 = vadd.f32 %v968_v19, %v789_v22 }
 0x27c   : > { %v1171_v24 = vpop.f32.mrf.mxu0 }
 0x27d   : > { %869 = vst.msk [vmem:[%s1473_s22] sm:$0xff] %vm868_vm1, %v790_v23  ;;  %v805_v25 = vadd.f32 %v1171_v24, %v968_v19 }
 0x27e   : > { %v799_v26 = vpop.f32.mrf.mxu0 }
 0x27f   : > { %872 = vst.msk [vmem:[%s1473_s22 + $0x18] sm:$0xff] %vm868_vm1, %v805_v25  ;;  %v800_v27 = vadd.f32 %v968_v19, %v799_v26 }
 0x280   : > { %v1174_v28 = vpop.f32.mrf.mxu0 }
 0x281   : > { %871 = vst.msk [vmem:[%s1473_s22 + $0x10] sm:$0xff] %vm868_vm1, %v800_v27  ;;  %v815_v29 = vadd.f32 %v1174_v28, %v968_v19 }
 0x282   : > { %v809_v30 = vpop.f32.mrf.mxu0 }
 0x283   : > { %874 = vst.msk [vmem:[%s1473_s22 + $0x28] sm:$0xff] %vm868_vm1, %v815_v29  ;;  %v810_v31 = vadd.f32 %v968_v19, %v809_v30 }
 0x284   : > { %v1177_v32 = vpop.f32.mrf.mxu0 }
 0x285   : > { %873 = vst.msk [vmem:[%s1473_s22 + $0x20] sm:$0xff] %vm868_vm1, %v810_v31  ;;  %v825_v33 = vadd.f32 %v1177_v32, %v968_v19 }
 0x286   : > { %v819_v34 = vpop.f32.mrf.mxu0 }
 0x287   : > { %876 = vst.msk [vmem:[%s1473_s22 + $0x38] sm:$0xff] %vm868_vm1, %v825_v33  ;;  %v820_v35 = vadd.f32 %v968_v19, %v819_v34 }
 0x288   : > { %v1180_v36 = vpop.f32.mrf.mxu0 }
 0x289   : > { %875 = vst.msk [vmem:[%s1473_s22 + $0x30] sm:$0xff] %vm868_vm1, %v820_v35  ;;  %v835_v37 = vadd.f32 %v1180_v36, %v968_v19 }
 0x28a   : > { %v829_v38 = vpop.f32.mrf.mxu0 }
 0x28b   : > { %878 = vst.msk [vmem:[%s1473_s22 + $0x48] sm:$0xff] %vm868_vm1, %v835_v37  ;;  %v830_v39 = vadd.f32 %v968_v19, %v829_v38 }
 0x28c   : > { %v1183_v40 = vpop.f32.mrf.mxu0 }
 0x28d   : > { %877 = vst.msk [vmem:[%s1473_s22 + $0x40] sm:$0xff] %vm868_vm1, %v830_v39  ;;  %v845_v41 = vadd.f32 %v1183_v40, %v968_v19 }
 0x28e   : > { %v839_v42 = vpop.f32.mrf.mxu0 }
 0x28f   : > { %880 = vst.msk [vmem:[%s1473_s22 + $0x58] sm:$0xff] %vm868_vm1, %v845_v41  ;;  %v840_v43 = vadd.f32 %v968_v19, %v839_v42 }
 0x290   : > { %v1186_v44 = vpop.f32.mrf.mxu0 }
 0x291   : > { %879 = vst.msk [vmem:[%s1473_s22 + $0x50] sm:$0xff] %vm868_vm1, %v840_v43  ;;  %v855_v45 = vadd.f32 %v1186_v44, %v968_v19 }
 0x292   : > { %v849_v46 = vpop.f32.mrf.mxu0 }
 0x293   : > { %882 = vst.msk [vmem:[%s1473_s22 + $0x68] sm:$0xff] %vm868_vm1, %v855_v45  ;;  %v850_v47 = vadd.f32 %v968_v19, %v849_v46 }
 0x294   : > { %v1189_v48 = vpop.f32.mrf.mxu0 }
 0x295   : > { %881 = vst.msk [vmem:[%s1473_s22 + $0x60] sm:$0xff] %vm868_vm1, %v850_v47  ;;  %v865_v49 = vadd.f32 %v1189_v48, %v968_v19 }
 0x296   : > { %v859_v50 = vpop.f32.mrf.mxu0 }
 0x297   : > { %884 = vst.msk [vmem:[%s1473_s22 + $0x78] sm:$0xff] %vm868_vm1, %v865_v49  ;;  %v860_v51 = vadd.f32 %v968_v19, %v859_v50 }
 0x299   : > { %883 = vst.msk [vmem:[%s1473_s22 + $0x70] sm:$0xff] %vm868_vm1, %v860_v51 }
 0x29a PF: > { %s17_s24 = sadd.s32 1, %s1268_s24  }
 0x29b   : > { %p14_p4 = scmp.ge.s32.totalorder %s17_s24, 4  }
 0x29d   :  { %16 = sbr.rel (!%p14_p4) target bundleno = 1 (0x1), region = 78 }

</bundles_post_ra>
